<compile_context>
chip_gen: v7x
topology: tpu7x:2x2x1
jax: 0.10.0
libtpu: 0.0.40
codegen_flags: <defaults>
</compile_context>

<pallas_src>
import functools

import jax
import jax.numpy as jnp
from jax import lax
from jax.experimental import pallas as pl
from jax.experimental.pallas import tpu as pltpu


def _round_up(n, m):
    return ((n + m - 1) // m) * m


def _sigmoid(x):
    # exp on the EUP + approximate reciprocal on the EUP -> VALU slot stays free.
    return pl.reciprocal(1.0 + jnp.exp(-x), approx=True)


def _sndae_kernel(x_ref, wa_t_ref, ba_ref, wb_t_ref, bb_ref, o_ref):
    """Feature-major tile: o^T = sig(W_b^T @ sig(W_a^T @ x^T + b_a) + b_b).

    x_ref    : [tb, in_dim]   batch-major x tile (as stored in HBM)
    wa_t_ref : [hid, in_dim]  collapsed network1 weight, transposed (resident)
    ba_ref   : [hid, 1]       collapsed network1 bias (f32)
    wb_t_ref : [out, hid]     collapsed network2 weight, transposed (resident)
    bb_ref   : [out, 1]       collapsed network2 bias (f32)
    o_ref    : [out, tb]      feature-major output (batch on the 128-lane axis)
    """
    f32 = jnp.float32
    x = x_ref[...]
    # h^T[j, b] = sum_k W_a[k, j] * x[b, k]   (MXU-native "A @ B^T" contraction)
    h = lax.dot_general(
        wa_t_ref[...], x,
        dimension_numbers=(((1,), (1,)), ((), ())),
        preferred_element_type=f32)                      # [hid, tb]
    h = _sigmoid(h + ba_ref[...])
    o = jnp.dot(wb_t_ref[...], h.astype(wb_t_ref.dtype),
                preferred_element_type=f32)              # [out, tb]
    o_ref[...] = _sigmoid(o + bb_ref[...]).astype(o_ref.dtype)


@functools.partial(jax.jit, static_argnames=("tile_b", "feature_major_output"))
def sndae_forward(x, w_a, b_a, w_b, b_b, *, tile_b=8192,
                  feature_major_output=False):
    """x: [B, inputDim]; collapsed params in math orientation:
       w_a [in, hid], b_a [1, hid], w_b [hid, out], b_b [1, out].
       Compute dtype for the MXU dots follows x.dtype (bf16 recommended on
       v6e/v7x); accumulation, bias add and sigmoid are f32."""
    B, in_dim = x.shape
    hid = w_a.shape[-1]          # 28
    out_dim = w_b.shape[-1]      # 28
    cdt = x.dtype

    # ---- tile selection: batch lives on the 128-lane axis of the output ----
    padded_b = _round_up(B, 128)
    tb = min(_round_up(tile_b, 128), padded_b)
    # Prefer >= 4 pipeline steps (DMA/compute overlap); fall back to >= 2 so
    # v7x's second TensorCore still gets work for smallish batches.
    for min_steps in (4, 2):
        if padded_b // tb < min_steps and padded_b >= min_steps * 128:
            tb = _round_up(pl.cdiv(padded_b, min_steps), 128)
            break
    padded_b = _round_up(padded_b, tb)
    if padded_b != B:
        x = jnp.pad(x, ((0, padded_b - B), (0, 0)))
    grid = (padded_b // tb,)

    # Tiny params: transpose to feature-major, cast weights to compute dtype.
    wa_t = w_a.T.astype(cdt)                              # [hid, in_dim]
    wb_t = w_b.T.astype(cdt)                              # [out, hid]
    ba_c = b_a.reshape(1, hid).T.astype(jnp.float32)      # [hid, 1]
    bb_c = b_b.reshape(1, out_dim).T.astype(jnp.float32)  # [out, 1]

    itemsize = jnp.dtype(cdt).itemsize
    cost = pl.CostEstimate(
        flops=2 * padded_b * (in_dim * hid + hid * out_dim),
        transcendentals=2 * padded_b * (hid + out_dim),
        bytes_accessed=(padded_b * in_dim * itemsize
                        + padded_b * out_dim * itemsize
                        + (hid * in_dim + out_dim * hid) * itemsize
                        + (hid + out_dim) * 4),
    )

    out_t = pl.pallas_call(
        _sndae_kernel,
        out_shape=jax.ShapeDtypeStruct((out_dim, padded_b), cdt),
        grid=grid,
        in_specs=[
            pl.BlockSpec((tb, in_dim), lambda i: (i, 0)),      # x tile
            pl.BlockSpec((hid, in_dim), lambda i: (0, 0)),     # W_a^T (resident)
            pl.BlockSpec((hid, 1), lambda i: (0, 0)),          # b_a
            pl.BlockSpec((out_dim, hid), lambda i: (0, 0)),    # W_b^T (resident)
            pl.BlockSpec((out_dim, 1), lambda i: (0, 0)),      # b_b
        ],
        out_specs=pl.BlockSpec((out_dim, tb), lambda i: (0, i)),
        compiler_params=pltpu.CompilerParams(
            dimension_semantics=("parallel",)),
        cost_estimate=cost,
    )(x, wa_t, ba_c, wb_t, bb_c)

    if feature_major_output:
        return out_t[:, :B]
    # Layout plumbing back to the PyTorch [B, out] convention.
    return out_t[:, :B].T


def init_params(key, input_dim):
    """PyTorch-Linear-style init: U(-1/sqrt(fan_in), 1/sqrt(fan_in)).

    Weights returned as (in_features, out_features); biases as (1, out_features).
    """
    dims = [
        (input_dim, 14), (14, 28), (28, 28),   # network1
        (28, 14), (14, 28), (28, 28),          # network2
    ]
    params = []
    for (fan_in, fan_out) in dims:
        key, kw, kb = jax.random.split(key, 3)
        bound = 1.0 / (fan_in ** 0.5)
        w = jax.random.uniform(kw, (fan_in, fan_out), jnp.float32, -bound, bound)
        b = jax.random.uniform(kb, (1, fan_out), jnp.float32, -bound, bound)
        params += [w, b]
    return tuple(params)


def collapse_params(params):
    """Fold each bias-only 3-Linear chain into one (W, b).  Done once, offline."""
    w1, b1, w2, b2, w3, b3, w4, b4, w5, b5, w6, b6 = params
    w_a = w1 @ w2 @ w3
    b_a = (b1 @ w2 + b2) @ w3 + b3
    w_b = w4 @ w5 @ w6
    b_b = (b4 @ w5 + b5) @ w6 + b6
    return w_a, b_a, w_b, b_b


def sndae_reference(x, params):
    """Pure-JAX reference mirroring the PyTorch module layer by layer."""
    w1, b1, w2, b2, w3, b3, w4, b4, w5, b5, w6, b6 = params
    h = x @ w1 + b1
    h = h @ w2 + b2
    h = h @ w3 + b3
    h = jax.nn.sigmoid(h)
    h = h @ w4 + b4
    h = h @ w5 + b5
    h = h @ w6 + b6
    return jax.nn.sigmoid(h)


if __name__ == "__main__":
    INPUT_DIM = 41    # NSL-KDD-style feature vector
    BATCH = 200       # small test batch; padded to 256 -> 2 grid steps of 128

    key = jax.random.PRNGKey(0)
    key, kx = jax.random.split(key)
    x = jax.random.normal(kx, (BATCH, INPUT_DIM), jnp.float32)
    params = init_params(key, INPUT_DIM)
    w_a, b_a, w_b, b_b = collapse_params(params)

    ref = sndae_reference(x, params)

    # f32 path (works on all generations; only approx-reciprocal + layer
    # collapse reassociation differ from the PyTorch math).
    out32 = jax.block_until_ready(sndae_forward(x, w_a, b_a, w_b, b_b))
    assert out32.shape == (BATCH, 28)
    assert jnp.max(jnp.abs(out32 - ref)) < 1e-2, "f32 mismatch vs reference"

    # bf16 inference path (recommended on v6e/v7x: halves dominant HBM streams).
    out16 = jax.block_until_ready(
        sndae_forward(x.astype(jnp.bfloat16), w_a, b_a, w_b, b_b))
    assert out16.shape == (BATCH, 28)
    assert jnp.max(jnp.abs(out16.astype(jnp.float32) - ref)) < 3e-2, \
        "bf16 mismatch vs reference"

    print("KERNEL_OK")
</pallas_src>

<mosaic_0001>
module attributes {stable_mosaic.version = 11 : i64} {
  func.func @_sndae_kernel(%arg0: i32, %arg1: memref<128x41xf32, #tpu.memory_space<vmem>>, %arg2: memref<28x41xf32, #tpu.memory_space<vmem>>, %arg3: memref<28x1xf32, #tpu.memory_space<vmem>>, %arg4: memref<28x28xf32, #tpu.memory_space<vmem>>, %arg5: memref<28x1xf32, #tpu.memory_space<vmem>>, %arg6: memref<28x128xf32, #tpu.memory_space<vmem>>) attributes {dimension_semantics = [#tpu.dimension_semantics<parallel>], iteration_bounds = array<i64: 2>, scalar_prefetch = 0 : i64, scratch_operands = 0 : i64, tpu.core_type = #tpu.core_type<tc>, window_params = [{transform_indices = @transform_0, window_bounds = array<i64: 128, 41>}, {pipeline_mode = #tpu.pipeline_mode<synchronous>, transform_indices = @transform_1, window_bounds = array<i64: 28, 41>}, {pipeline_mode = #tpu.pipeline_mode<synchronous>, transform_indices = @transform_2, window_bounds = array<i64: 28, 1>}, {pipeline_mode = #tpu.pipeline_mode<synchronous>, transform_indices = @transform_3, window_bounds = array<i64: 28, 28>}, {pipeline_mode = #tpu.pipeline_mode<synchronous>, transform_indices = @transform_4, window_bounds = array<i64: 28, 1>}, {transform_indices = @transform_5, window_bounds = array<i64: 28, 128>}]} {
    %c0 = arith.constant 0 : index
    %c0_0 = arith.constant 0 : index
    %0 = vector.load %arg1[%c0, %c0_0] : memref<128x41xf32, #tpu.memory_space<vmem>>, vector<128x41xf32>
    %c0_1 = arith.constant 0 : index
    %c0_2 = arith.constant 0 : index
    %1 = vector.load %arg2[%c0_1, %c0_2] : memref<28x41xf32, #tpu.memory_space<vmem>>, vector<28x41xf32>
    %cst = arith.constant dense<0.000000e+00> : vector<28x128xf32>
    %2 = tpu.matmul %1, %0, %cst {dimension_numbers = #tpu.dot_dimension_numbers<[1], [1], [0], [0], [0, 0, 1, 0], [], []>} : vector<28x41xf32>, vector<128x41xf32>, vector<28x128xf32> -> vector<28x128xf32>
    %c0_3 = arith.constant 0 : index
    %c0_4 = arith.constant 0 : index
    %3 = vector.load %arg3[%c0_3, %c0_4] : memref<28x1xf32, #tpu.memory_space<vmem>>, vector<28x1xf32>
    %4 = vector.broadcast %3 : vector<28x1xf32> to vector<28x128xf32>
    %5 = arith.addf %2, %4 : vector<28x128xf32>
    %cst_5 = arith.constant 0.000000e+00 : f32
    %6 = vector.broadcast %cst_5 : f32 to vector<28x128xf32>
    %7 = arith.subf %6, %5 : vector<28x128xf32>
    %8 = math.exp %7 : vector<28x128xf32>
    %cst_6 = arith.constant 1.000000e+00 : f32
    %9 = vector.broadcast %cst_6 : f32 to vector<28x128xf32>
    %10 = arith.addf %9, %8 : vector<28x128xf32>
    %11 = tpu.reciprocal %10 {approx = true} : vector<28x128xf32> -> vector<28x128xf32>
    %c0_7 = arith.constant 0 : index
    %c0_8 = arith.constant 0 : index
    %12 = vector.load %arg4[%c0_7, %c0_8] : memref<28x28xf32, #tpu.memory_space<vmem>>, vector<28x28xf32>
    %cst_9 = arith.constant dense<0.000000e+00> : vector<28x128xf32>
    %13 = tpu.matmul %12, %11, %cst_9 {dimension_numbers = #tpu.dot_dimension_numbers<[1], [0], [0], [1], [0, 0, 1, 1], [], []>} : vector<28x28xf32>, vector<28x128xf32>, vector<28x128xf32> -> vector<28x128xf32>
    %c0_10 = arith.constant 0 : index
    %c0_11 = arith.constant 0 : index
    %14 = vector.load %arg5[%c0_10, %c0_11] : memref<28x1xf32, #tpu.memory_space<vmem>>, vector<28x1xf32>
    %15 = vector.broadcast %14 : vector<28x1xf32> to vector<28x128xf32>
    %16 = arith.addf %13, %15 : vector<28x128xf32>
    %cst_12 = arith.constant 0.000000e+00 : f32
    %17 = vector.broadcast %cst_12 : f32 to vector<28x128xf32>
    %18 = arith.subf %17, %16 : vector<28x128xf32>
    %19 = math.exp %18 : vector<28x128xf32>
    %cst_13 = arith.constant 1.000000e+00 : f32
    %20 = vector.broadcast %cst_13 : f32 to vector<28x128xf32>
    %21 = arith.addf %20, %19 : vector<28x128xf32>
    %22 = tpu.reciprocal %21 {approx = true} : vector<28x128xf32> -> vector<28x128xf32>
    %c0_14 = arith.constant 0 : index
    %c0_15 = arith.constant 0 : index
    %23 = vector.load %arg6[%c0_14, %c0_15] : memref<28x128xf32, #tpu.memory_space<vmem>>, vector<28x128xf32>
    tpu.vector_store %arg6[%c0_14, %c0_15], %22 {strides = array<i32>} : memref<28x128xf32, #tpu.memory_space<vmem>>, vector<28x128xf32>,
    return
  }
  func.func @transform_0(%arg0: i32) -> (i32, i32) {
    %c0_i32 = arith.constant 0 : i32
    %c0_i32_0 = arith.constant 0 : i32
    return %arg0, %c0_i32 : i32, i32
  }
  func.func @transform_1(%arg0: i32) -> (i32, i32) {
    %c0_i32 = arith.constant 0 : i32
    %c0_i32_0 = arith.constant 0 : i32
    %c0_i32_1 = arith.constant 0 : i32
    return %c0_i32, %c0_i32_0 : i32, i32
  }
  func.func @transform_2(%arg0: i32) -> (i32, i32) {
    %c0_i32 = arith.constant 0 : i32
    %c0_i32_0 = arith.constant 0 : i32
    %c0_i32_1 = arith.constant 0 : i32
    return %c0_i32, %c0_i32_0 : i32, i32
  }
  func.func @transform_3(%arg0: i32) -> (i32, i32) {
    %c0_i32 = arith.constant 0 : i32
    %c0_i32_0 = arith.constant 0 : i32
    %c0_i32_1 = arith.constant 0 : i32
    return %c0_i32, %c0_i32_0 : i32, i32
  }
  func.func @transform_4(%arg0: i32) -> (i32, i32) {
    %c0_i32 = arith.constant 0 : i32
    %c0_i32_0 = arith.constant 0 : i32
    %c0_i32_1 = arith.constant 0 : i32
    return %c0_i32, %c0_i32_0 : i32, i32
  }
  func.func @transform_5(%arg0: i32) -> (i32, i32) {
    %c0_i32 = arith.constant 0 : i32
    %c0_i32_0 = arith.constant 0 : i32
    return %c0_i32, %arg0 : i32, i32
  }
}

</mosaic_0001>

<bundles_post_ra>
// kernel: sndae_forward.1
= control target key start
LH: loop header
LB: loop body
LE: loop exit
PB: predicated region body
PF: predicated region fallthrough
CT: control target
= control target key end

     0   :  { %s979_s18 = smov 0   ;;  %s981_s19 = smov 0   ;;  %s1141_s0 = inlined_call_operand.vmem [shape: f32[256,41], index: 0, kind: input, shape index: {}]   ;;  %s1142_s1 = inlined_call_operand.vmem [shape: f32[28,41], index: 1, kind: input, shape index: {}]   ;;  %s1143_s2 = inlined_call_operand.vmem [shape: f32[28,1], index: 2, kind: input, shape index: {}]   ;;  %s1144_s3 = inlined_call_operand.vmem [shape: f32[28,28], index: 3, kind: input, shape index: {}]   ;;  %s1145_s4 = inlined_call_operand.vmem [shape: f32[28,1], index: 4, kind: input, shape index: {}]   ;;  %s1146_s5 = inlined_call_operand.vmem [shape: f32[28,256], index: 5, kind: output, shape index: {}]  }
   0x1   :  { %s983_s20 = smov 0  }
   0x2 LB: > { %s992_s21 = sadd.s32 4294967295, %s945_s20   ;;  %s994_s22 = sadd.s32 1, %s945_s20   ;;  %s945_s20 = sphi %s983_s20, %s1152_s20   ;;  %s941_s19 = sphi %s981_s19, %s1151_s19   ;;  %s937_s18 = sphi %s979_s18, %s1150_s18  }
   0x3   : > { %s129_s23 = ssub.s32 %s945_s20, %s994_s22  ;;  %s132_s24 = sadd.s32 1, %s941_s19 }
   0x4   : > { %p130_p0 = scmp.eq.s32.totalorder %s129_s23, 0  ;;  %p142_p1 = scmp.ne.s32.totalorder %s941_s19, %s937_s18 }
   0x5   : > { %p143_p2 = scmp.eq.s32.totalorder %s992_s21, 1  ;;  %p692_p3 = scmp.ge.s32.totalorder %s945_s20, 1 }
   0x6   : > { %s1002_s25 = scalar_select %p130_p0, %s941_s19, %s132_s24  }
   0x7   : > { %p1004_p4 = por %p143_p2, %p142_p1  ;;  %p188_p5 = scmp.lt.s32.totalorder %s945_s20, 3 }
   0x9   : > { %p189_p6 = pnand %p692_p3, %p188_p5 }
   0xa   : > { %s694_s27 = sshll.u32 (!%p189_p6), %s992_s21, 4  ;;  %vm265_vm0 = vcmask (!%p189_p6), 334848   ;;  %v237_v0 = vld [vmem:[%s1142_s1] sm:$0xff] (!%p189_p6)  ;;  %v947_v1 = vmov (!%p189_p6), 0   ;;  %v243_v3 = vld [vmem:[%s1143_s2 + $0x10] sm:$0xff] (!%p189_p6)  ;;  %v242_v4 = vld [vmem:[%s1143_s2 + $0x8] sm:$0xff] (!%p189_p6) }
   0xb   : > { %192 = sbr.rel (%p189_p6) target bundleno = 597 (0x255), region = 40  ;;  %p216_p7 = scmp.lt.s32.totalorder (!%p189_p6), %s694_s27, 31  ;;  %785 = vmatprep.mubr.msk.f32.mxu0 (!%p189_p6), %vm265_vm0, %v237_v0  ;;  %889 = vset.pattern.permute.xlu0 (!%p189_p6), %v947_v1  ;;  %v241_v2 = vld [vmem:[%s1143_s2] sm:$0xff] (!%p189_p6)  ;;  %v244_v5 = vld [vmem:[%s1143_s2 + $0x18] sm:$0xf] (!%p189_p6)  ;;  %vm1032_vm1 = vmpackc.low (!%p189_p6), %vm265_vm0, %vm265_vm0  ;;  %vm459_vm2 = vcmask (!%p189_p6), 228352  }
   0xc   : > { %247 = vperm.xlu0 (!%p189_p6), %889, %v241_v2   ;;  %890 = vset.pattern.permute.xlu1 (!%p189_p6), %v947_v1  ;;  %v435_v7 = vld [vmem:[%s1145_s4] sm:$0xff] (!%p189_p6)  ;;  %v436_v13 = vld [vmem:[%s1145_s4 + $0x8] sm:$0xff] (!%p189_p6)  ;;  %v437_v15 = vld [vmem:[%s1145_s4 + $0x10] sm:$0xff] (!%p189_p6)  ;;  %vm472_vm3 = vcmask (!%p189_p6), 1043456   ;;  %vm948_vm4 = vmmov (!%p189_p6), 1   ;;  %s212_s24 = sand.u32 (!%p189_p6), 1, %s937_s18  }
   0xd   : > { %257 = vperm.xlu1 (!%p189_p6), %890, %v243_v3   ;;  %v438_v16 = vld [vmem:[%s1145_s4 + $0x18] sm:$0xf] (!%p189_p6)  ;;  %v238_v35 = vld [vmem:[%s1142_s1 + $0x8] sm:$0xff] (!%p189_p6)  ;;  %v239_v36 = vld [vmem:[%s1142_s1 + $0x10] sm:$0xff] (!%p189_p6) }
   0xe   : > { %v240_v37 = vld [vmem:[%s1142_s1 + $0x18] sm:$0xf] (!%p189_p6)  ;;  %v431_v38 = vld [vmem:[%s1144_s3] sm:$0xff] (!%p189_p6)  ;;  %vm858_vm5 = vmpackc.low (!%p189_p6), %vm472_vm3, %vm948_vm4 }
   0xf   : > { %799 = vmatprep.mubr.msk.f32.mxu1 (!%p189_p6), %vm459_vm2, %v431_v38 }
  0x10   : > { %252 = vperm.xlu0 (!%p189_p6), %889, %v242_v4  }
  0x11   : > { %262 = vperm.xlu1 (!%p189_p6), %890, %v244_v5  }
  0x12   : > { %s1154_s27 = smov (!%p216_p7, %s694_s27), 31  ;;  %s722_s29 = sshll.u32 (%p1004_p4), %s992_s21, 3 }
  0x13   : > { %s695_s13 = sshll.u32 %s1154_s27, 3  ;;  %s693_s27 = sshll.u32 %s212_s24, 5 }
  0x14   : > { %s1028_s16 = scalar_lea.vmem %s1141_s0, %s695_s13  ;;  %441 = vperm.xlu0 %889, %v435_v7   ;;  %s214_s28 = scalar_lea.vmem [#allocation2], %s693_s27 }
  0x15   : > { %v221_v8 = vld [vmem:[%s1028_s16] sm:$0xff]  ;;  %v222_v9 = vld [vmem:[%s1028_s16 + $0x8] sm:$0xff]  ;;  %v223_v10 = vld [vmem:[%s1028_s16 + $0x10] sm:$0xff]  ;;  %446 = vperm.xlu1 %890, %v436_v13   ;;  %s593_s6 = scalar_lea.vmem (%p1004_p4), %s1146_s5, %s722_s29 }
  0x16   : > { %v805_v11 = vpack.c.bf16 %v222_v9, %v221_v8  ;;  %v224_v12 = vld [vmem:[%s1028_s16 + $0x18] sm:$0xff]  ;;  %v225_v17 = vld [vmem:[%s1028_s16 + $0x20] sm:$0xff]  ;;  %v226_v18 = vld [vmem:[%s1028_s16 + $0x28] sm:$0xff] }
  0x17   : > { %v811_v14 = vpack.c.bf16 %v224_v12, %v223_v10  ;;  %v817_v19 = vpack.c.bf16 %v226_v18, %v225_v17  ;;  %v227_v20 = vld [vmem:[%s1028_s16 + $0x30] sm:$0xff]  ;;  %v228_v21 = vld [vmem:[%s1028_s16 + $0x38] sm:$0xff]  ;;  %v229_v23 = vld [vmem:[%s1028_s16 + $0x40] sm:$0xff] }
  0x18   : > { %807 = vmatprep.subr.msk.bf16.mxu0 %vm1032_vm1, %v805_v11  ;;  %451 = vperm.xlu0 %889, %v437_v15   ;;  %v823_v22 = vpack.c.bf16 %v228_v21, %v227_v20  ;;  %v230_v24 = vld [vmem:[%s1028_s16 + $0x48] sm:$0xff]  ;;  %v231_v26 = vld [vmem:[%s1028_s16 + $0x50] sm:$0xff]  ;;  %v232_v27 = vld [vmem:[%s1028_s16 + $0x58] sm:$0xff] }
  0x19   : > { %810 = vmatpush3.bf16.xpose.msk.msra.mxu0 %vm1032_vm1, %v805_v11  ;;  %456 = vperm.xlu1 %890, %v438_v16   ;;  %v829_v25 = vpack.c.bf16 %v230_v24, %v229_v23  ;;  %v835_v28 = vpack.c.bf16 %v232_v27, %v231_v26  ;;  %v233_v29 = vld [vmem:[%s1028_s16 + $0x60] sm:$0xff]  ;;  %v234_v30 = vld [vmem:[%s1028_s16 + $0x68] sm:$0xff]  ;;  %v235_v32 = vld [vmem:[%s1028_s16 + $0x70] sm:$0xff] }
  0x1a   : > { %813 = vmatprep.subr.msk.bf16.mxu0 %vm1032_vm1, %v811_v14  ;;  %v841_v31 = vpack.c.bf16 %v234_v30, %v233_v29  ;;  %v236_v33 = vld [vmem:[%s1028_s16 + $0x78] sm:$0xff]  ;;  %v432_v9 = vld [vmem:[%s1144_s3 + $0x8] sm:$0xff]  ;;  %v433_v10 = vld [vmem:[%s1144_s3 + $0x10] sm:$0xff] }
  0x1b   : > { %v847_v34 = vpack.c.bf16 %v236_v33, %v235_v32  ;;  %v434_v11 = vld [vmem:[%s1144_s3 + $0x18] sm:$0xf] }
  0x21   : > { %816 = vmatpush3.bf16.xpose.msk.msra.mxu0 %vm1032_vm1, %v811_v14 }
  0x22   : > { %819 = vmatprep.subr.msk.bf16.mxu0 %vm1032_vm1, %v817_v19 }
  0x29   : > { %822 = vmatpush3.bf16.xpose.msk.msra.mxu0 %vm1032_vm1, %v817_v19 }
  0x2a   : > { %825 = vmatprep.subr.msk.bf16.mxu0 %vm1032_vm1, %v823_v22 }
  0x31   : > { %828 = vmatpush3.bf16.xpose.msk.msra.mxu0 %vm1032_vm1, %v823_v22 }
  0x32   : > { %831 = vmatprep.subr.msk.bf16.mxu0 %vm1032_vm1, %v829_v25 }
  0x39   : > { %834 = vmatpush3.bf16.xpose.msk.msra.mxu0 %vm1032_vm1, %v829_v25 }
  0x3a   : > { %837 = vmatprep.subr.msk.bf16.mxu0 %vm1032_vm1, %v835_v28 }
  0x41   : > { %840 = vmatpush3.bf16.xpose.msk.msra.mxu0 %vm1032_vm1, %v835_v28 }
  0x42   : > { %843 = vmatprep.subr.msk.bf16.mxu0 %vm1032_vm1, %v841_v31 }
  0x49   : > { %846 = vmatpush3.bf16.xpose.msk.msra.mxu0 %vm1032_vm1, %v841_v31 }
  0x4a   : > { %849 = vmatprep.subr.msk.bf16.mxu0 %vm1032_vm1, %v847_v34 }
  0x51   : > { %852 = vmatpush3.bf16.xpose.msk.msra.mxu0 %vm1032_vm1, %v847_v34 }
  0x58   : > { %786 = vmatmul.mubr.msk.f32.vlgmr.msra.gmra.mrb[0].mxu0 %vm265_vm0, %v238_v35 }
  0x59   : > { %788 = vmatprep.mubr.msk.f32.mxu0 %vm265_vm0, %v239_v36 }
  0x5c   : > { %789 = vmatmul.mubr.msk.f32.gmra.mrb[2].mxu0 %vm265_vm0, %v240_v37 }
  0x8b   : > { %v248_v39 = vpop.permute.xlu0 %247 }
  0x8c   : > { %v258_v40 = vpop.permute.xlu1 %257 }
  0x8f   : > { %v253_v41 = vpop.permute.xlu0 %252 }
  0x90   : > { %v263_v47 = vpop.permute.xlu1 %262 }
  0x93   : > { %v442_v13 = vpop.permute.xlu0 %441 }
  0x94   : > { %v447_v12 = vpop.permute.xlu1 %446 }
  0x97   : > { %v452_v22 = vpop.permute.xlu0 %451 }
  0x98   : > { %v457_v19 = vpop.permute.xlu1 %456 }
 0x12b   : > { %v787_v42 = vpop.f32.mrb[0].mxu0 }
 0x12c   : > { %v398_v43 = vadd.f32 %v787_v42, %v253_v41  ;;  %v392_v44 = vpop.f32.mrb[1].mxu0 }
 0x12d   : > { %v393_v45 = vadd.f32 %v392_v44, %v248_v39 }
 0x12e   : > { %v412_v46 = vsub.f32 0.0, %v398_v43 }
 0x12f   : > { %v411_v48 = vsub.f32 0.0, %v393_v45  ;;  %v790_v49 = vpop.f32.mrb[2].mxu0 }
 0x130   : > { %v417_v50 = vmul.f32 1.442695, %v412_v46  ;;  %v408_v51 = vadd.f32 %v790_v49, %v263_v47  ;;  %v402_v52 = vpop.f32.mrb[3].mxu0 }
 0x131   : > { %v415_v53 = vmul.f32 1.442695, %v411_v48  ;;  %v403_v54 = vadd.f32 %v402_v52, %v258_v40 }
 0x132   : > { %891 = vpow2.f32 %v417_v50  ;;  %v414_v55 = vsub.f32 0.0, %v408_v51 }
 0x133   : > { %893 = vpow2.f32 %v415_v53  ;;  %v413_v56 = vsub.f32 0.0, %v403_v54 }
 0x134   : > { %v421_v57 = vmul.f32 1.442695, %v414_v55 }
 0x135   : > { %v419_v58 = vmul.f32 1.442695, %v413_v56 }
 0x136   : > { %895 = vpow2.f32 %v421_v57 }
 0x137   : > { %897 = vpow2.f32 %v419_v58 }
 0x13c   : > { %v892_v59 = vpop.eup %891 }
 0x13d   : > { %v894_v60 = vpop.eup %893  ;;  %v424_v61 = vadd.f32 1.0, %v892_v59 }
 0x13e   : > { %v423_v62 = vadd.f32 1.0, %v894_v60 }
 0x13f   : > { %899 = vrcp.f32 %v424_v61 }
 0x140   : > { %v896_v63 = vpop.eup %895  ;;  %901 = vrcp.f32 %v423_v62 }
 0x141   : > { %v898_v0 = vpop.eup %897  ;;  %v426_v1 = vadd.f32 1.0, %v896_v63 }
 0x142   : > { %v425_v2 = vadd.f32 1.0, %v898_v0 }
 0x143   : > { %903 = vrcp.f32 %v426_v1 }
 0x144   : > { %905 = vrcp.f32 %v425_v2 }
 0x149   : > { %v900_v3 = vpop.eup %899 }
 0x14a   : > { %v902_v4 = vpop.eup %901 }
 0x14b   : > { %v853_v5 = vpack.c.bf16 %v900_v3, %v902_v4 }
 0x14d   : > { %v904_v6 = vpop.eup %903  ;;  %854 = vmatprep.subr.bf16.mxu1 %v853_v5 }
 0x14e   : > { %v906_v7 = vpop.eup %905  ;;  %856 = vmatpush3.bf16.msra.mxu1 %v853_v5 }
 0x14f   : > { %v857_v8 = vpack.c.bf16 %v904_v6, %v906_v7 }
 0x151   : > { %859 = vmatprep.subr.msk.bf16.mxu1 %vm858_vm5, %v857_v8 }
 0x152   : > { %862 = vmatpush3.bf16.msk.msra.mxu1 %vm858_vm5, %v857_v8 }
 0x155   : > { %800 = vmatmul.mubr.msk.f32.vlgmr.msra.gmra.mrb[0].mxu1 %vm459_vm2, %v432_v9 }
 0x156   : > { %802 = vmatprep.mubr.msk.f32.mxu1 %vm459_vm2, %v433_v10 }
 0x159   : > { %803 = vmatmul.mubr.msk.f32.gmra.mrb[2].mxu1 %vm459_vm2, %v434_v11 }
 0x228   : > { %v801_v14 = vpop.f32.mrb[0].mxu1 }
 0x229   : > { %v548_v15 = vadd.f32 %v801_v14, %v447_v12  ;;  %v542_v16 = vpop.f32.mrb[1].mxu1 }
 0x22a   : > { %v543_v17 = vadd.f32 %v542_v16, %v442_v13 }
 0x22b   : > { %v562_v18 = vsub.f32 0.0, %v548_v15 }
 0x22c   : > { %v561_v20 = vsub.f32 0.0, %v543_v17  ;;  %v804_v21 = vpop.f32.mrb[2].mxu1 }
 0x22d   : > { %v567_v23 = vmul.f32 1.442695, %v562_v18  ;;  %v558_v24 = vadd.f32 %v804_v21, %v457_v19  ;;  %v552_v25 = vpop.f32.mrb[3].mxu1 }
 0x22e   : > { %v565_v26 = vmul.f32 1.442695, %v561_v20  ;;  %v553_v27 = vadd.f32 %v552_v25, %v452_v22 }
 0x22f   : > { %907 = vpow2.f32 %v567_v23  ;;  %v564_v28 = vsub.f32 0.0, %v558_v24 }
 0x230   : > { %909 = vpow2.f32 %v565_v26  ;;  %v563_v29 = vsub.f32 0.0, %v553_v27 }
 0x231   : > { %v571_v30 = vmul.f32 1.442695, %v564_v28 }
 0x232   : > { %v569_v31 = vmul.f32 1.442695, %v563_v29 }
 0x233   : > { %911 = vpow2.f32 %v571_v30 }
 0x234   : > { %913 = vpow2.f32 %v569_v31 }
 0x239   : > { %v908_v32 = vpop.eup %907 }
 0x23a   : > { %v910_v33 = vpop.eup %909  ;;  %v574_v34 = vadd.f32 1.0, %v908_v32 }
 0x23b   : > { %v573_v35 = vadd.f32 1.0, %v910_v33 }
 0x23c   : > { %915 = vrcp.f32 %v574_v34 }
 0x23d   : > { %v912_v36 = vpop.eup %911  ;;  %917 = vrcp.f32 %v573_v35 }
 0x23e   : > { %v914_v37 = vpop.eup %913  ;;  %v576_v38 = vadd.f32 1.0, %v912_v36 }
 0x23f   : > { %v575_v39 = vadd.f32 1.0, %v914_v37 }
 0x240   : > { %919 = vrcp.f32 %v576_v38 }
 0x241   : > { %921 = vrcp.f32 %v575_v39 }
 0x246   : > { %v916_v40 = vpop.eup %915  ;;  %591 = sbr.rel (!%p1004_p4) target bundleno = 597 (0x255), region = 44 }
 0x247   : > { %v918_v41 = vpop.eup %917  ;;  %582 = vst [vmem:[%s214_s28 + $0x8] sm:$0xff] %v916_v40 }
 0x248   : > { %581 = vst [vmem:[%s214_s28] sm:$0xff] %v918_v41 }
 0x24a   : > { %v920_v42 = vpop.eup %919 }
 0x24b   : > { %v922_v43 = vpop.eup %921  ;;  %584 = vst [vmem:[%s214_s28 + $0x18] sm:$0xf] %v920_v42 }
 0x24c   : > { %583 = vst [vmem:[%s214_s28 + $0x10] sm:$0xff] %v922_v43 }
 0x24e   : > { %v629_v45 = vld [vmem:[%s214_s28 + $0x8] sm:$0xff] }
 0x24f   : > { %v627_v44 = vld [vmem:[%s214_s28] sm:$0xff]  ;;  %630 = vst [vmem:[%s593_s6 + $0x10] sm:$0xff] %v629_v45 }
 0x250   : > { %628 = vst [vmem:[%s593_s6] sm:$0xff] %v627_v44 }
 0x252   : > { %v633_v47 = vld [vmem:[%s214_s28 + $0x18] sm:$0xff] }
 0x253   : > { %v631_v46 = vld [vmem:[%s214_s28 + $0x10] sm:$0xff]  ;;  %634 = vst [vmem:[%s593_s6 + $0x30] sm:$0xff] %v633_v47 }
 0x254   : > { %632 = vst [vmem:[%s593_s6 + $0x20] sm:$0xff] %v631_v46 }
 0x255 PF: > { %p12_p8 = scmp.ge.s32.totalorder %s994_s22, 4   ;;  %s1150_s18 = smov %s941_s19 }
 0x256   : > { %s1151_s19 = smov %s1002_s25  ;;  %s1152_s20 = smov %s994_s22 }
 0x257   :  { %14 = sbr.rel (!%p12_p8) target bundleno = 2 (0x2), region = 108 }

</bundles_post_ra>
